<compile_context>
chip_gen: v7x
topology: tpu7x:2x2x1
jax: 0.10.0
libtpu: 0.0.40
codegen_flags: <defaults>
</compile_context>

<pallas_src>
import functools

import jax
import jax.numpy as jnp
import numpy as np
from jax.experimental import pallas as pl
from jax.experimental.pallas import tpu as pltpu

_LANE = 128


def _round_up(x, m):
    return ((x + m - 1) // m) * m


@functools.lru_cache(maxsize=None)
def _chip_config():
    """Per-generation tile caps / VMEM budget (conservative fallback = v7x)."""
    try:
        kind = jax.devices()[0].device_kind.lower()
    except Exception:
        kind = ""
    vmem_phys = None
    try:
        vmem_phys = int(pltpu.get_tpu_info().vmem_capacity_bytes)
    except Exception:
        pass
    if vmem_phys is None:
        vmem_phys = (128 << 20) if ("v5" in kind or "v6" in kind) else (64 << 20)
    multi_tc = "v7" in kind
    if vmem_phys >= (100 << 20):            # v5e / v6e: 128 MiB physical VMEM
        return dict(tm_max=512, tn_max=1024, tk_max=1024,
                    vmem_cap=96 << 20, multi_tc=multi_tc)
    return dict(tm_max=256, tn_max=512, tk_max=512,    # v7x: 64 MiB physical
                vmem_cap=40 << 20, multi_tc=multi_tc)


def _pick_tile(total_p, cap):
    """Largest multiple of 128 <= cap that divides total_p (total_p % 128 == 0)."""
    t = max(_LANE, min(cap, total_p) // _LANE * _LANE)
    while total_p % t != 0:
        t -= _LANE
    return t


def _make_kernel(precision):
    def _linear_kernel(x_ref, w_ref, b_ref, o_ref):
        k = pl.program_id(2)

        @pl.when(k == 0)
        def _():
            # Init the VMEM-resident f32 output tile with the bias (added once).
            o_ref[...] = jnp.broadcast_to(b_ref[...], o_ref.shape)

        o_ref[...] += jnp.dot(
            x_ref[...], w_ref[...],
            preferred_element_type=jnp.float32,
            precision=precision,
        )

    return _linear_kernel


def prepare_classifier_params(weight, bias, *, compute_dtype=jnp.bfloat16):
    """Run-once weight preprocessing: transpose + cast + lane-dense pad.

    weight: [C, D] (PyTorch nn.Linear layout), bias: [C].
    Returns (w_p [Dp, Cp] in compute_dtype, b_p [1, Cp] f32).
    """
    C, D = weight.shape
    assert bias.shape == (C,)
    Dp, Cp = _round_up(D, _LANE), _round_up(C, _LANE)

    w = weight.T                                     # [D, C]
    if w.dtype != compute_dtype:
        w = w.astype(compute_dtype)
    if (Dp, Cp) != (D, C):
        # D (contraction) padding MUST be zeros for correctness; padded C
        # columns are sliced off after the kernel.
        w = jnp.pad(w, ((0, Dp - D), (0, Cp - C)))

    b = bias.astype(jnp.float32).reshape(1, C)
    if Cp != C:
        b = jnp.pad(b, ((0, 0), (0, Cp - C)))
    return w, b


@functools.partial(jax.jit, static_argnames=("num_classes",))
def classifier_forward_prepared(x, w_p, b_p, *, num_classes):
    """y = x @ W.T + b given pre-padded params from prepare_classifier_params."""
    B, D = x.shape
    Dp, Cp = w_p.shape
    compute_dtype = w_p.dtype
    ib = compute_dtype.itemsize
    cfg = _chip_config()

    # ---- tile derivation (all static python) --------------------------------
    sub = 8 * max(1, 4 // ib)                 # sublane packing: f32 -> 8, bf16 -> 16
    tm = min(cfg["tm_max"], _round_up(B, sub))
    Bp = _round_up(B, tm)
    tk = _pick_tile(Dp, cfg["tk_max"])
    tn = _pick_tile(Cp, cfg["tn_max"])
    # v7x megacore: ensure the parallel axes produce >=2 programs when possible.
    if cfg["multi_tc"] and (Bp // tm) * (Cp // tn) < 2 and Cp >= 2 * _LANE:
        tn = _pick_tile(Cp, max(_LANE, Cp // 2))

    grid = (Bp // tm, Cp // tn, Dp // tk)

    # ---- VMEM budget (never below the 32 MiB default scoped limit) ----------
    w_buffers = 2
    vmem_needed = (
        2 * tm * tk * ib            # x tiles (double buffered)
        + w_buffers * tk * tn * ib  # weight tiles
        + 2 * 8 * tn * 4            # bias tiles (padded to 8 sublanes, f32)
        + 2 * tm * tn * 4           # f32 output tiles (accumulated in place)
    )
    if grid[2] >= 3:
        with_3 = vmem_needed + tk * tn * ib
        if int(1.3 * with_3) + (8 << 20) <= cfg["vmem_cap"]:
            w_buffers, vmem_needed = 3, with_3
    vmem_limit = min(cfg["vmem_cap"], max(32 << 20, int(1.5 * vmem_needed)))

    # ---- activation cast / pad (conditional; zeros only needed along D) -----
    x_c = x if x.dtype == compute_dtype else x.astype(compute_dtype)
    if (Bp, Dp) != (B, D):
        x_c = jnp.pad(x_c, ((0, Bp - B), (0, Dp - D)))

    precision = (jax.lax.Precision.HIGHEST
                 if compute_dtype == jnp.float32 else None)

    if w_buffers == 2:
        w_spec = pl.BlockSpec((tk, tn), lambda i, j, k: (k, j))
    else:
        w_spec = pl.BlockSpec((tk, tn), lambda i, j, k: (k, j),
                              pipeline_mode=pl.Buffered(w_buffers))

    cost = pl.CostEstimate(
        flops=2 * Bp * Cp * Dp,
        transcendentals=0,
        bytes_accessed=(Bp * Dp * ib + Dp * Cp * ib + Cp * 4 + Bp * Cp * 4),
    )

    y_p = pl.pallas_call(
        _make_kernel(precision),
        out_shape=jax.ShapeDtypeStruct((Bp, Cp), jnp.float32),
        grid=grid,
        in_specs=[
            pl.BlockSpec((tm, tk), lambda i, j, k: (i, k)),   # x
            w_spec,                                           # W (D x C)
            pl.BlockSpec((1, tn), lambda i, j, k: (0, j)),    # bias follows N tile
        ],
        out_specs=pl.BlockSpec((tm, tn), lambda i, j, k: (i, j)),
        compiler_params=pltpu.CompilerParams(
            dimension_semantics=("parallel", "parallel", "arbitrary"),
            vmem_limit_bytes=vmem_limit,
        ),
        cost_estimate=cost,
    )(x_c, w_p, b_p)

    return y_p[:B, :num_classes]


def classifier_forward(x, weight, bias, *, compute_dtype=jnp.bfloat16):
    """Convenience wrapper (does the run-once weight prep inline)."""
    w_p, b_p = prepare_classifier_params(weight, bias, compute_dtype=compute_dtype)
    return classifier_forward_prepared(x, w_p, b_p, num_classes=weight.shape[0])


if __name__ == "__main__":
    # Small shapes consistent with the module: batch=8, input_dim=32, classes=8.
    B, D, C = 8, 32, 8

    key = jax.random.PRNGKey(0)
    kx, kw, kb = jax.random.split(key, 3)

    # Deterministic "PyTorch-like" init: U(-1/sqrt(D), 1/sqrt(D)).
    bound = float(1.0 / np.sqrt(np.float32(D)))
    weight = jax.random.uniform(kw, (C, D), jnp.float32, -bound, bound)  # torch [C, D]
    bias = jax.random.uniform(kb, (C,), jnp.float32, -bound, bound)
    x = jax.random.normal(kx, (B, D), jnp.float32)

    # Host-side f32 reference (same math as torch nn.Linear forward).
    y_ref = np.asarray(x) @ np.asarray(weight).T + np.asarray(bias)

    # Fast path: bf16 MXU inputs, f32 accumulation; weights prepared once and reused.
    w_bf16, b_bf16 = prepare_classifier_params(weight, bias, compute_dtype=jnp.bfloat16)
    y_bf16 = jax.block_until_ready(
        classifier_forward_prepared(x, w_bf16, b_bf16, num_classes=C))
    assert y_bf16.shape == (B, C)
    assert np.allclose(np.asarray(y_bf16), y_ref, atol=5e-2, rtol=5e-2), "bf16 path mismatch"

    # Exact-semantics fallback: f32 MXU inputs at Precision.HIGHEST.
    w_f32, b_f32 = prepare_classifier_params(weight, bias, compute_dtype=jnp.float32)
    y_f32 = jax.block_until_ready(
        classifier_forward_prepared(x, w_f32, b_f32, num_classes=C))
    assert y_f32.shape == (B, C)
    assert np.allclose(np.asarray(y_f32), y_ref, atol=1e-4, rtol=1e-4), "f32 path mismatch"

    print("KERNEL_OK")
</pallas_src>

<mosaic_0001>
module attributes {stable_mosaic.version = 11 : i64} {
  func.func @_linear_kernel(%arg0: i32, %arg1: i32, %arg2: i32, %arg3: memref<16x128xbf16, #tpu.memory_space<vmem>>, %arg4: memref<128x128xbf16, #tpu.memory_space<vmem>>, %arg5: memref<1x128xf32, #tpu.memory_space<vmem>>, %arg6: memref<16x128xf32, #tpu.memory_space<vmem>>) attributes {dimension_semantics = [#tpu.dimension_semantics<parallel>, #tpu.dimension_semantics<parallel>, #tpu.dimension_semantics<arbitrary>], iteration_bounds = array<i64: 1, 1, 1>, scalar_prefetch = 0 : i64, scratch_operands = 0 : i64, tpu.core_type = #tpu.core_type<tc>, window_params = [{transform_indices = @transform_0, window_bounds = array<i64: 16, 128>}, {transform_indices = @transform_1, window_bounds = array<i64: 128, 128>}, {transform_indices = @transform_2, window_bounds = array<i64: 1, 128>}, {transform_indices = @transform_3, window_bounds = array<i64: 16, 128>}]} {
    %c0_i32 = arith.constant 0 : i32
    %0 = arith.cmpi eq, %arg2, %c0_i32 : i32
    %1 = arith.extui %0 : i1 to i32
    %c0_i32_0 = arith.constant 0 : i32
    %2 = arith.cmpi ne, %1, %c0_i32_0 : i32
    scf.if %2 {
      %c0_8 = arith.constant 0 : index
      %c0_9 = arith.constant 0 : index
      %9 = vector.load %arg5[%c0_8, %c0_9] : memref<1x128xf32, #tpu.memory_space<vmem>>, vector<1x128xf32>
      %10 = vector.shape_cast %9 : vector<1x128xf32> to vector<1x128xf32>
      %11 = vector.broadcast %10 : vector<1x128xf32> to vector<16x128xf32>
      %c0_10 = arith.constant 0 : index
      %c0_11 = arith.constant 0 : index
      %12 = vector.load %arg6[%c0_10, %c0_11] : memref<16x128xf32, #tpu.memory_space<vmem>>, vector<16x128xf32>
      tpu.vector_store %arg6[%c0_10, %c0_11], %11 {strides = array<i32>} : memref<16x128xf32, #tpu.memory_space<vmem>>, vector<16x128xf32>,
    } else {
    }
    %c0 = arith.constant 0 : index
    %c0_1 = arith.constant 0 : index
    %3 = vector.load %arg6[%c0, %c0_1] : memref<16x128xf32, #tpu.memory_space<vmem>>, vector<16x128xf32>
    %c0_2 = arith.constant 0 : index
    %c0_3 = arith.constant 0 : index
    %4 = vector.load %arg3[%c0_2, %c0_3] : memref<16x128xbf16, #tpu.memory_space<vmem>>, vector<16x128xbf16>
    %c0_4 = arith.constant 0 : index
    %c0_5 = arith.constant 0 : index
    %5 = vector.load %arg4[%c0_4, %c0_5] : memref<128x128xbf16, #tpu.memory_space<vmem>>, vector<128x128xbf16>
    %cst = arith.constant dense<0.000000e+00> : vector<16x128xf32>
    %6 = tpu.matmul %4, %5, %cst {dimension_numbers = #tpu.dot_dimension_numbers<[1], [0], [0], [1], [0, 0, 1, 1], [], []>} : vector<16x128xbf16>, vector<128x128xbf16>, vector<16x128xf32> -> vector<16x128xf32>
    %7 = arith.addf %3, %6 : vector<16x128xf32>
    %c0_6 = arith.constant 0 : index
    %c0_7 = arith.constant 0 : index
    %8 = vector.load %arg6[%c0_6, %c0_7] : memref<16x128xf32, #tpu.memory_space<vmem>>, vector<16x128xf32>
    tpu.vector_store %arg6[%c0_6, %c0_7], %7 {strides = array<i32>} : memref<16x128xf32, #tpu.memory_space<vmem>>, vector<16x128xf32>,
    return
  }
  func.func @transform_0(%arg0: i32, %arg1: i32, %arg2: i32) -> (i32, i32) {
    %c0_i32 = arith.constant 0 : i32
    return %arg0, %arg2 : i32, i32
  }
  func.func @transform_1(%arg0: i32, %arg1: i32, %arg2: i32) -> (i32, i32) {
    %c0_i32 = arith.constant 0 : i32
    return %arg2, %arg1 : i32, i32
  }
  func.func @transform_2(%arg0: i32, %arg1: i32, %arg2: i32) -> (i32, i32) {
    %c0_i32 = arith.constant 0 : i32
    %c0_i32_0 = arith.constant 0 : i32
    return %c0_i32, %arg1 : i32, i32
  }
  func.func @transform_3(%arg0: i32, %arg1: i32, %arg2: i32) -> (i32, i32) {
    %c0_i32 = arith.constant 0 : i32
    return %arg0, %arg1 : i32, i32
  }
}

</mosaic_0001>

<bundles_post_ra>
// kernel: classifier_forward_prepared.1
= control target key start
LH: loop header
LB: loop body
LE: loop exit
PB: predicated region body
PF: predicated region fallthrough
CT: control target
= control target key end

     0   :  { %8 = vsyncpa [#allocation3], 0  ;;  %s243_s12 = smov [#allocation2]   ;;  %s292_s0 = inlined_call_operand.vmem [shape: bf16[16,128], index: 0, kind: input, shape index: {}]   ;;  %s293_s1 = inlined_call_operand.hbm [shape: bf16[128,128], index: 1, kind: input, shape index: {}]   ;;  %s294_s2 = inlined_call_operand.vmem [shape: f32[1,128], index: 2, kind: input, shape index: {}]   ;;  %s295_s3 = inlined_call_operand.vmem [shape: f32[16,128], index: 3, kind: output, shape index: {}]  }
   0x1   :  { %s16_s13 = sshll.u32 %s243_s12, 4  ;;  %s219_s16 = scalar_lea.hbm %s293_s1, 1024  ;;  %s17_s13 = int_to_ptr.vmem [resolvable:$true] %s16_s13 }
   0x2   :  { %p220_p0 = scmp.ne.s32.totalorder %s293_s1, %s219_s16  ;;  %p223_p1 = scmp.lt.u32.totalorder %s219_s16, %s293_s1 }
   0x4   :  { %p225_p2 = pnand %p223_p1, %p220_p0 }
   0x6   :  { %228 = shalt.err (!%p225_p2)
}
   0x7   :  { %s229_s21 = scalar_lea.vmem %s17_s13, 1024  ;;  %p234_p4 = scmp.lt.s32.totalorder %s17_s13, %s17_s13 }
   0x8   :  { %p230_p3 = scmp.ne.s32.totalorder %s17_s13, %s229_s21  ;;  %p235_p5 = scmp.lt.s32.totalorder %s229_s21, %s229_s21 }
   0xa   :  { %p236_p6 = por %p235_p5, %p234_p4 }
   0xc   :  { %p237_p7 = pnand %p236_p6, %p230_p3 }
   0xe   :  { %240 = shalt.err (!%p237_p7)
}
   0xf   :  { %s244_s22 = smov 64   ;;  %s245_s23 = smov 4  }
  0x10   :  { %22 = dma.hbm_to_vmem [thread:$0]  %s293_s1, 1024, %s17_s13, [#allocation3], %s244_s22, %s244_s22, %s245_s23  }
  0x11   :  { %241 = dma.done.wait [#allocation3], 1024  }
  0x12   :  { %242 = vsyncadd [#allocation3], 4294966272  ;;  %v246_v0 = vmov 0.0   ;;  %vm247_vm0 = vmmov 0   ;;  %v210_v1 = vld [vmem:[#allocation2] sm:$0xff]   ;;  %v211_v2 = vld [vmem:[#allocation2 + $0x8] sm:$0xff]  }
  0x13   :  { %185 = vmatprep.subr.bf16.mxu0 %v246_v0  ;;  %201 = vmatprep.mubr.msk.bf16.mxu0 %vm247_vm0, %v246_v0  ;;  %v212_v3 = vld [vmem:[#allocation2 + $0x10] sm:$0xff]   ;;  %v213_v4 = vld [vmem:[#allocation2 + $0x18] sm:$0xff]   ;;  %v214_v5 = vld [vmem:[#allocation2 + $0x20] sm:$0xff]  }
  0x14   :  { %186 = vmatpush3.bf16.msra.mxu0 %v210_v1  ;;  %v215_v6 = vld [vmem:[#allocation2 + $0x28] sm:$0xff]   ;;  %v216_v7 = vld [vmem:[#allocation2 + $0x30] sm:$0xff]   ;;  %v217_v8 = vld [vmem:[#allocation2 + $0x38] sm:$0xff]  }
  0x15   :  { %187 = vmatprep.subr.bf16.mxu0 %v246_v0  ;;  %v218_v9 = vld [vmem:[%s292_s0] sm:$0xff]  }
  0x16   :  { %v166_v10 = vld [vmem:[%s294_s2] ss:$0 sm:$0xff] }
  0x18   :  { %188 = vmatpush3.bf16.msra.mxu0 %v211_v2 }
  0x19   :  { %189 = vmatprep.subr.bf16.mxu0 %v246_v0 }
  0x1c   :  { %190 = vmatpush3.bf16.msra.mxu0 %v212_v3 }
  0x1d   :  { %191 = vmatprep.subr.bf16.mxu0 %v246_v0 }
  0x20   :  { %192 = vmatpush3.bf16.msra.mxu0 %v213_v4 }
  0x21   :  { %193 = vmatprep.subr.bf16.mxu0 %v246_v0 }
  0x24   :  { %194 = vmatpush3.bf16.msra.mxu0 %v214_v5 }
  0x25   :  { %195 = vmatprep.subr.bf16.mxu0 %v246_v0 }
  0x28   :  { %196 = vmatpush3.bf16.msra.mxu0 %v215_v6 }
  0x29   :  { %197 = vmatprep.subr.bf16.mxu0 %v246_v0 }
  0x2c   :  { %198 = vmatpush3.bf16.msra.mxu0 %v216_v7 }
  0x2d   :  { %199 = vmatprep.subr.bf16.mxu0 %v246_v0 }
  0x30   :  { %200 = vmatpush3.bf16.msra.mxu0 %v217_v8 }
  0x33   :  { %202 = vmatmul.mubr.bf16.vlgmr.msra.gmra.mrb[0].mxu0 %v218_v9 }
 0x106   :  { %v150_v11 = vpop.f32.mrb[0].mxu0 }
 0x107   :  { %v157_v12 = vadd.f32 %v166_v10, %v150_v11  ;;  %v203_v13 = vpop.f32.mrb[1].mxu0 }
 0x108   :  { %v153_v14 = vpop.f32.mrb[2].mxu0 }
 0x109   :  { %159 = vst [vmem:[%s295_s3] sm:$0xff] %v157_v12  ;;  %v158_v15 = vadd.f32 %v166_v10, %v153_v14  ;;  %v204_v16 = vpop.f32.mrb[3].mxu0 }
 0x10b   :  { %160 = vst [vmem:[%s295_s3 + $0x8] sm:$0xff] %v158_v15 }
 0x10c   :  { %165 = vsyncpa [#allocation3], 1 }

</bundles_post_ra>
